<compile_context>
chip_gen: v5e
topology: v5e:2x2
jax: 0.10.0
libtpu: 0.0.40
codegen_flags: <defaults>
</compile_context>

<pallas_src>
import functools

import jax
import jax.numpy as jnp
from jax.experimental import pallas as pl
from jax.experimental.pallas import tpu as pltpu

D_IN, D_H1, D_H2, D_OUT = 784, 128, 256, 10
D_OUT_PAD = 128   # lane-dense output width (real logits are the first 10 cols)


def mlp_kernel(x_ref, w1_ref, b1_ref, w2_ref, b2_ref, w3_ref, b3_ref, o_ref):
    """One batch tile: three MXU matmuls, f32 accumulation, f32 bias adds."""
    # Cast x to the MXU input dtype in-register (no extra HBM pass for bf16).
    x = x_ref[...].astype(w1_ref.dtype)
    h1 = jnp.dot(x, w1_ref[...], preferred_element_type=jnp.float32) + b1_ref[...]
    h2 = (
        jnp.dot(h1.astype(w2_ref.dtype), w2_ref[...],
                preferred_element_type=jnp.float32)
        + b2_ref[...]
    )
    y = (
        jnp.dot(h2.astype(w3_ref.dtype), w3_ref[...],
                preferred_element_type=jnp.float32)
        + b3_ref[...]
    )
    o_ref[...] = y.astype(o_ref.dtype)


def _round_up(x, m):
    return ((x + m - 1) // m) * m


def _pick_batch_tile(B):
    """Batch tile: as large as useful (<=512 rows) while keeping >=2 grid steps
    when B allows it, so the 'parallel' axis feeds both v7x TensorCores."""
    if B <= 16:
        return _round_up(B, 8)                 # tiny batches: one small block
    unit = 128 if B > 256 else 8               # 128-row granularity when there's room
    return int(min(512, _round_up(pl.cdiv(B, 2), unit)))


def _resident_spec(shape):
    """Weight/bias block: constant index_map (fetched once across the grid).
    Request single buffering to halve its VMEM footprint; fall back cleanly if
    this JAX version's BlockSpec does not accept pipeline_mode."""
    index_map = lambda i: (0, 0)
    try:
        return pl.BlockSpec(shape, index_map, pipeline_mode=pl.Buffered(1))
    except TypeError:
        return pl.BlockSpec(shape, index_map)


def prepare_params(w1, b1, w2, b2, w3, b3, *, compute_dtype=jnp.float32):
    """One-time weight prep (hoisted out of the per-call path).

    Weights are stored (in_features, out_features) so the kernel does x @ W + b.
    The last layer is padded 10 -> 128 output lanes (zeros => exact math).
    Biases stay f32 and 2D for broadcast."""
    w1_c = w1.astype(compute_dtype)
    w2_c = w2.astype(compute_dtype)
    w3_p = jnp.pad(w3, ((0, 0), (0, D_OUT_PAD - D_OUT))).astype(compute_dtype)
    b1_2d = b1.reshape(1, D_H1).astype(jnp.float32)
    b2_2d = b2.reshape(1, D_H2).astype(jnp.float32)
    b3_2d = (jnp.pad(b3, ((0, D_OUT_PAD - D_OUT),))
             .reshape(1, D_OUT_PAD).astype(jnp.float32))
    return (w1_c, b1_2d, w2_c, b2_2d, w3_p, b3_2d)


@functools.partial(jax.jit, static_argnames=("batch_tile", "out_dtype"))
def mnist_nn_forward(x, params, *, batch_tile=None, out_dtype=None):
    """Forward pass of Mnist_NN.

    x: (B, 784) in its native dtype (read once, cast in-kernel if needed).
    params: output of prepare_params().
    """
    w1, b1_2d, w2, b2_2d, w3_p, b3_2d = params
    B = x.shape[0]
    out_dtype = jnp.dtype(x.dtype if out_dtype is None else out_dtype)
    bt = _pick_batch_tile(B) if batch_tile is None else int(batch_tile)
    grid = (pl.cdiv(B, bt),)

    # VMEM budget derived from actual tiles (x/out double-buffered; weights
    # counted x2 conservatively even though Buffered(1) is requested).
    w_bytes = int(w1.size * w1.dtype.itemsize + w2.size * w2.dtype.itemsize
                  + w3_p.size * w3_p.dtype.itemsize
                  + 4 * (b1_2d.size + b2_2d.size + b3_2d.size))
    x_tile_bytes = bt * D_IN * x.dtype.itemsize
    o_tile_bytes = bt * D_OUT_PAD * out_dtype.itemsize
    vmem_limit = int(2 * (x_tile_bytes + o_tile_bytes) + 2 * w_bytes + (8 << 20))

    cost = pl.CostEstimate(
        flops=2 * B * (D_IN * D_H1 + D_H1 * D_H2 + D_H2 * D_OUT_PAD),
        transcendentals=0,
        bytes_accessed=int(B * D_IN * x.dtype.itemsize + w_bytes
                           + B * D_OUT_PAD * out_dtype.itemsize),
    )

    out = pl.pallas_call(
        mlp_kernel,
        out_shape=jax.ShapeDtypeStruct((B, D_OUT_PAD), out_dtype),
        grid_spec=pltpu.PrefetchScalarGridSpec(
            num_scalar_prefetch=0,
            grid=grid,
            in_specs=[
                pl.BlockSpec((bt, D_IN), lambda i: (i, 0)),  # x tile (unpadded)
                _resident_spec((D_IN, D_H1)),      # w1
                _resident_spec((1, D_H1)),         # b1
                _resident_spec((D_H1, D_H2)),      # w2
                _resident_spec((1, D_H2)),         # b2
                _resident_spec((D_H2, D_OUT_PAD)),  # w3 (N padded to 128)
                _resident_spec((1, D_OUT_PAD)),    # b3 (N padded to 128)
            ],
            out_specs=pl.BlockSpec((bt, D_OUT_PAD), lambda i: (i, 0)),
        ),
        compiler_params=pltpu.CompilerParams(
            dimension_semantics=("parallel",),   # batch tiles shard across TCs
            vmem_limit_bytes=vmem_limit,
        ),
        cost_estimate=cost,
    )(x, w1, b1_2d, w2, b2_2d, w3_p, b3_2d)

    # Drop the 118 zero-padded logit columns.
    return out[:, :D_OUT]


def init_params(key):
    """Deterministic init mimicking PyTorch nn.Linear default U(-1/sqrt(fan_in), +)."""
    def linear(key, fan_in, fan_out):
        kw, kb = jax.random.split(key)
        bound = 1.0 / jnp.sqrt(fan_in)
        # PyTorch stores weight as (out, in); we keep (in, out) for x @ W.
        w = jax.random.uniform(kw, (fan_in, fan_out), jnp.float32, -bound, bound)
        b = jax.random.uniform(kb, (fan_out,), jnp.float32, -bound, bound)
        return w, b

    k1, k2, k3 = jax.random.split(key, 3)
    w1, b1 = linear(k1, D_IN, D_H1)
    w2, b2 = linear(k2, D_H1, D_H2)
    w3, b3 = linear(k3, D_H2, D_OUT)
    return w1, b1, w2, b2, w3, b3


if __name__ == "__main__":
    key = jax.random.PRNGKey(0)
    kx, kp = jax.random.split(key)

    # Small batch; exercises the auto batch_tile (16 -> 2 grid steps) and a
    # ragged final block (24 = 16 + 8) with no host-side padding of x.
    B = 24
    x = jax.random.normal(kx, (B, D_IN), jnp.float32)
    w1, b1, w2, b2, w3, b3 = init_params(kp)

    # Reference in plain JAX (same math as the PyTorch forward).
    y_ref = ((x @ w1 + b1) @ w2 + b2) @ w3 + b3

    # f32 path: exact up to f32 rounding.
    params_f32 = prepare_params(w1, b1, w2, b2, w3, b3, compute_dtype=jnp.float32)
    y_f32 = jax.block_until_ready(mnist_nn_forward(x, params_f32))
    assert y_f32.shape == (B, D_OUT)
    assert jnp.allclose(y_f32, y_ref, atol=1e-4, rtol=1e-4)

    # bf16 MXU-input path: weights pre-cast once, x cast in-register inside the
    # kernel (x stays f32 in HBM); h1/h2 also downcast between layers -> loose tol.
    params_bf16 = prepare_params(w1, b1, w2, b2, w3, b3, compute_dtype=jnp.bfloat16)
    y_bf16 = jax.block_until_ready(mnist_nn_forward(x, params_bf16))
    assert y_bf16.shape == (B, D_OUT)
    assert jnp.allclose(y_bf16, y_ref, atol=0.25, rtol=0.05)

    print("KERNEL_OK")
</pallas_src>

<mosaic_0001>
module attributes {stable_mosaic.version = 11 : i64} {
  func.func @mlp_kernel(%arg0: i32, %arg1: memref<16x784xf32, #tpu.memory_space<vmem>>, %arg2: memref<784x128xf32, #tpu.memory_space<vmem>>, %arg3: memref<1x128xf32, #tpu.memory_space<vmem>>, %arg4: memref<128x256xf32, #tpu.memory_space<vmem>>, %arg5: memref<1x256xf32, #tpu.memory_space<vmem>>, %arg6: memref<256x128xf32, #tpu.memory_space<vmem>>, %arg7: memref<1x128xf32, #tpu.memory_space<vmem>>, %arg8: memref<16x128xf32, #tpu.memory_space<vmem>>) attributes {dimension_semantics = [#tpu.dimension_semantics<parallel>], iteration_bounds = array<i64: 2>, scalar_prefetch = 0 : i64, scratch_operands = 0 : i64, tpu.core_type = #tpu.core_type<tc>, window_params = [{transform_indices = @transform_0, window_bounds = array<i64: 16, 784>}, {pipeline_mode = #tpu.pipeline_mode<synchronous>, transform_indices = @transform_1, window_bounds = array<i64: 784, 128>}, {pipeline_mode = #tpu.pipeline_mode<synchronous>, transform_indices = @transform_2, window_bounds = array<i64: 1, 128>}, {pipeline_mode = #tpu.pipeline_mode<synchronous>, transform_indices = @transform_3, window_bounds = array<i64: 128, 256>}, {pipeline_mode = #tpu.pipeline_mode<synchronous>, transform_indices = @transform_4, window_bounds = array<i64: 1, 256>}, {pipeline_mode = #tpu.pipeline_mode<synchronous>, transform_indices = @transform_5, window_bounds = array<i64: 256, 128>}, {pipeline_mode = #tpu.pipeline_mode<synchronous>, transform_indices = @transform_6, window_bounds = array<i64: 1, 128>}, {transform_indices = @transform_7, window_bounds = array<i64: 16, 128>}]} {
    %c0 = arith.constant 0 : index
    %c0_0 = arith.constant 0 : index
    %0 = vector.load %arg1[%c0, %c0_0] : memref<16x784xf32, #tpu.memory_space<vmem>>, vector<16x784xf32>
    %c0_1 = arith.constant 0 : index
    %c0_2 = arith.constant 0 : index
    %1 = vector.load %arg2[%c0_1, %c0_2] : memref<784x128xf32, #tpu.memory_space<vmem>>, vector<784x128xf32>
    %cst = arith.constant dense<0.000000e+00> : vector<16x128xf32>
    %2 = tpu.matmul %0, %1, %cst {dimension_numbers = #tpu.dot_dimension_numbers<[1], [0], [0], [1], [0, 0, 1, 1], [], []>} : vector<16x784xf32>, vector<784x128xf32>, vector<16x128xf32> -> vector<16x128xf32>
    %c0_3 = arith.constant 0 : index
    %c0_4 = arith.constant 0 : index
    %3 = vector.load %arg3[%c0_3, %c0_4] : memref<1x128xf32, #tpu.memory_space<vmem>>, vector<1x128xf32>
    %4 = vector.broadcast %3 : vector<1x128xf32> to vector<16x128xf32>
    %5 = arith.addf %2, %4 : vector<16x128xf32>
    %c0_5 = arith.constant 0 : index
    %c0_6 = arith.constant 0 : index
    %6 = vector.load %arg4[%c0_5, %c0_6] : memref<128x256xf32, #tpu.memory_space<vmem>>, vector<128x256xf32>
    %cst_7 = arith.constant dense<0.000000e+00> : vector<16x256xf32>
    %7 = tpu.matmul %5, %6, %cst_7 {dimension_numbers = #tpu.dot_dimension_numbers<[1], [0], [0], [1], [0, 0, 1, 1], [], []>} : vector<16x128xf32>, vector<128x256xf32>, vector<16x256xf32> -> vector<16x256xf32>
    %c0_8 = arith.constant 0 : index
    %c0_9 = arith.constant 0 : index
    %8 = vector.load %arg5[%c0_8, %c0_9] : memref<1x256xf32, #tpu.memory_space<vmem>>, vector<1x256xf32>
    %9 = vector.broadcast %8 : vector<1x256xf32> to vector<16x256xf32>
    %10 = arith.addf %7, %9 : vector<16x256xf32>
    %c0_10 = arith.constant 0 : index
    %c0_11 = arith.constant 0 : index
    %11 = vector.load %arg6[%c0_10, %c0_11] : memref<256x128xf32, #tpu.memory_space<vmem>>, vector<256x128xf32>
    %cst_12 = arith.constant dense<0.000000e+00> : vector<16x128xf32>
    %12 = tpu.matmul %10, %11, %cst_12 {dimension_numbers = #tpu.dot_dimension_numbers<[1], [0], [0], [1], [0, 0, 1, 1], [], []>} : vector<16x256xf32>, vector<256x128xf32>, vector<16x128xf32> -> vector<16x128xf32>
    %c0_13 = arith.constant 0 : index
    %c0_14 = arith.constant 0 : index
    %13 = vector.load %arg7[%c0_13, %c0_14] : memref<1x128xf32, #tpu.memory_space<vmem>>, vector<1x128xf32>
    %14 = vector.broadcast %13 : vector<1x128xf32> to vector<16x128xf32>
    %15 = arith.addf %12, %14 : vector<16x128xf32>
    %c0_15 = arith.constant 0 : index
    %c0_16 = arith.constant 0 : index
    %16 = vector.load %arg8[%c0_15, %c0_16] : memref<16x128xf32, #tpu.memory_space<vmem>>, vector<16x128xf32>
    tpu.vector_store %arg8[%c0_15, %c0_16], %15 {strides = array<i32>} : memref<16x128xf32, #tpu.memory_space<vmem>>, vector<16x128xf32>,
    return
  }
  func.func @transform_0(%arg0: i32) -> (i32, i32) {
    %c0_i32 = arith.constant 0 : i32
    %c0_i32_0 = arith.constant 0 : i32
    return %arg0, %c0_i32 : i32, i32
  }
  func.func @transform_1(%arg0: i32) -> (i32, i32) {
    %c0_i32 = arith.constant 0 : i32
    %c0_i32_0 = arith.constant 0 : i32
    %c0_i32_1 = arith.constant 0 : i32
    return %c0_i32, %c0_i32_0 : i32, i32
  }
  func.func @transform_2(%arg0: i32) -> (i32, i32) {
    %c0_i32 = arith.constant 0 : i32
    %c0_i32_0 = arith.constant 0 : i32
    %c0_i32_1 = arith.constant 0 : i32
    return %c0_i32, %c0_i32_0 : i32, i32
  }
  func.func @transform_3(%arg0: i32) -> (i32, i32) {
    %c0_i32 = arith.constant 0 : i32
    %c0_i32_0 = arith.constant 0 : i32
    %c0_i32_1 = arith.constant 0 : i32
    return %c0_i32, %c0_i32_0 : i32, i32
  }
  func.func @transform_4(%arg0: i32) -> (i32, i32) {
    %c0_i32 = arith.constant 0 : i32
    %c0_i32_0 = arith.constant 0 : i32
    %c0_i32_1 = arith.constant 0 : i32
    return %c0_i32, %c0_i32_0 : i32, i32
  }
  func.func @transform_5(%arg0: i32) -> (i32, i32) {
    %c0_i32 = arith.constant 0 : i32
    %c0_i32_0 = arith.constant 0 : i32
    %c0_i32_1 = arith.constant 0 : i32
    return %c0_i32, %c0_i32_0 : i32, i32
  }
  func.func @transform_6(%arg0: i32) -> (i32, i32) {
    %c0_i32 = arith.constant 0 : i32
    %c0_i32_0 = arith.constant 0 : i32
    %c0_i32_1 = arith.constant 0 : i32
    return %c0_i32, %c0_i32_0 : i32, i32
  }
  func.func @transform_7(%arg0: i32) -> (i32, i32) {
    %c0_i32 = arith.constant 0 : i32
    %c0_i32_0 = arith.constant 0 : i32
    return %arg0, %c0_i32 : i32, i32
  }
}

</mosaic_0001>

<bundles_post_ra>
// kernel: mnist_nn_forward.1
= control target key start
LH: loop header
LB: loop body
LE: loop exit
PB: predicated region body
PF: predicated region fallthrough
CT: control target
= control target key end

     0   :  { %s1778_s0 = inlined_call_operand.hbm [shape: f32[24,784], index: 0, kind: input, shape index: {}]   ;;  %s1779_s1 = inlined_call_operand.hbm [shape: f32[784,128], index: 1, kind: input, shape index: {}]   ;;  %s1780_s2 = inlined_call_operand.vmem [shape: f32[1,128], index: 2, kind: input, shape index: {}]   ;;  %s1781_s3 = inlined_call_operand.hbm [shape: f32[128,256], index: 3, kind: input, shape index: {}]   ;;  %s1782_s4 = inlined_call_operand.vmem [shape: f32[1,256], index: 4, kind: input, shape index: {}]   ;;  %s1783_s5 = inlined_call_operand.hbm [shape: f32[256,128], index: 5, kind: input, shape index: {}]   ;;  %s1784_s6 = inlined_call_operand.vmem [shape: f32[1,128], index: 6, kind: input, shape index: {}]   ;;  %s1785_s7 = inlined_call_operand.vmem [shape: f32[24,128], index: 7, kind: output, shape index: {}]  }
   0x1   :  { %1787 = sst [smem:[#allocation13_spill]] %s1779_s1 }
   0x2   :  { %1788 = sst [smem:[#allocation14_spill]] %s1781_s3 }
   0x3   :  { %12 = vsyncpa [#allocation3], 0 }
   0x4   :  { %14 = vsyncpa [#allocation3 + $0x1], 0 }
   0x5   :  { %15 = vsyncpa [#allocation5], 0 }
   0x6   :  { %16 = vsyncpa [#allocation8], 0  ;;  %s1559_s24 = smov 0   ;;  %s1561_s25 = smov 0  }
   0x7   :  { %s1563_s26 = smov 0   ;;  %s1565_s27 = smov 0  }
   0x8 LB: > { %s1578_s28 = sadd.s32 4294967295, %s1475_s27   ;;  %s1581_s29 = sadd.s32 1, %s1475_s27   ;;  %s1475_s27 = sphi %s1565_s27, %s1804_s27   ;;  %s1471_s26 = sphi %s1563_s26, %s1803_s26   ;;  %s1467_s25 = sphi %s1561_s25, %s1802_s25   ;;  %s1463_s24 = sphi %s1559_s24, %s1801_s24  }
   0x9   : > { %s26_s30 = ssub.s32 %s1475_s27, %s1581_s29  ;;  %s29_s8 = sadd.s32 1, %s1471_s26 }
   0xa   : > { %p27_p0 = scmp.eq.s32.totalorder %s26_s30, 0  ;;  %p36_p1 = scmp.ne.s32.totalorder %s1471_s26, %s1467_s25 }
   0xb   : > { %p37_p2 = scmp.eq.s32.totalorder %s1475_s27, 0  ;;  %p42_p3 = scmp.ne.s32.totalorder %s1467_s25, %s1463_s24 }
   0xc   : > { %s1591_s9 = scalar_select %p27_p0, %s1471_s26, %s29_s8  }
   0xd   : > { %p1593_p4 = por %p37_p2, %p36_p1  ;;  %p1786_p5 = scmp.eq.s32.totalorder %s1578_s28, 0 }
   0xe   : > { %p192_p6 = scmp.eq.s32.totalorder %s1578_s28, 1  ;;  %p1078_p7 = scmp.ge.s32.totalorder %s1475_s27, 1 }
   0xf   : > { %p1602_p8 = por %p1786_p5, %p42_p3  ;;  %p205_p9 = scmp.lt.s32.totalorder %s1475_s27, 3 }
  0x10   : > { %p1607_p10 = por %p192_p6, %p36_p1  ;;  %s1793_s1 = sld [smem:[#allocation13_spill]] }
  0x11   : > { %p1611_p11 = pnand %p1078_p7, %p205_p9  ;;  %s1509_s17 = smov [#allocation4]  }
  0x12   : > { %s218_s18 = sshll.u32 %s1509_s17, 4  ;;  %s1795_s3 = sld [smem:[#allocation14_spill]]  ;;  %s219_s18 = int_to_ptr.vmem [resolvable:$true] %s218_s18 }
  0x13   : > { %p1149_p12 = pneg %p1611_p11  ;;  %s1510_s23 = smov 128  }
  0x14   : > { %s1511_s24 = smov 8   ;;  %s1512_s30 = smov [#allocation6]  }
  0x15   : > { %p1622_p13 = pnand %p1149_p12, %p1786_p5  ;;  %s235_s8 = sshll.u32 %s1512_s30, 4  ;;  %s236_s8 = int_to_ptr.vmem [resolvable:$true] %s235_s8 }
  0x16   : > { %s216_s16 = sshll.u32 %s1793_s1, 4  ;;  %s1513_s14 = smov 256   ;;  %s217_s16 = int_to_ptr.hbm [resolvable:$true] %s216_s16 }
  0x17   : > { %1152 = dma.hbm_to_vmem [thread:$0]  (!%p1622_p13), %s217_s16, 12544, %s219_s18, [#allocation5], %s1510_s23, %s1510_s23, %s1511_s24  }
  0x18   : > { %s233_s22 = sshll.u32 %s1795_s3, 4  ;;  %s1514_s15 = smov 16   ;;  %s234_s22 = int_to_ptr.hbm [resolvable:$true] %s233_s22 }
  0x19   : > { %1155 = dma.hbm_to_vmem [thread:$0]  (!%p1622_p13), %s234_s22, 4096, %s236_s8, [#allocation5], %s1513_s14, %s1513_s14, %s1514_s15  }
  0x1a   : > { %s250_s20 = sshll.u32 %s1783_s5, 4  ;;  %s1515_s21 = smov [#allocation7]   ;;  %s251_s20 = int_to_ptr.hbm [resolvable:$true] %s250_s20 }
  0x1b   : > { %s252_s3 = sshll.u32 %s1515_s21, 4  ;;  %p1082_p0 = scmp.ge.s32.totalorder %s1475_s27, 2  ;;  %s253_s3 = int_to_ptr.vmem [resolvable:$true] %s252_s3 }
  0x1c   : > { %1158 = dma.hbm_to_vmem [thread:$0]  (!%p1622_p13), %s251_s20, 4096, %s253_s3, [#allocation8], %s1510_s23, %s1510_s23, %s1511_s24  }
  0x1d   : > { %265 = sbr.rel (%p1082_p0) target bundleno = 75 (0x4b), region = 40 }
  0x22   : > { %268 = sbr.rel (!%p1593_p4) target bundleno = 75 (0x4b), region = 44  ;;  %s269_s16 = sand.u32 (%p1593_p4), 1, %s1471_s26  }
  0x23   : > { %s1083_s18 = sshll.u32 (%p1593_p4), %s1475_s27, 1  ;;  %s1133_s22 = smul.u32 (%p1593_p4), 112, %s269_s16 }
  0x24   : > { %s275_s30 = ssub.s32 (%p1593_p4), 3, %s1083_s18  ;;  %s1643_s15 = scalar_lea.sflag (%p1593_p4), [#allocation3], %s269_s16 }
  0x25   : > { %p276_p1 = scmp.lt.s32.totalorder (%p1593_p4), %s275_s30, 2  ;;  %s273_s3 = scalar_lea.vmem (%p1593_p4), [#allocation2], %s1133_s22 }
  0x27   : > { %s1806_s30 = smov (!%p276_p1, %s275_s30), 2 }
  0x28   : > { %s1085_s1 = smul.u32 56, %s1806_s30 }
  0x2a   : > { %s280_s8 = ssub.s32 112, %s1085_s1 }
  0x2b   : > { %s281_s14 = sshll.u32 %s280_s8, 4 }
  0x2c   : > { %282 = vsyncadd %s1643_s15, %s281_s14  ;;  %p1646_p2 = scmp.ne.s32.totalorder %s1085_s1, 0  ;;  %s1134_s19 = smul.u32 112, %s1475_s27 }
  0x2d   : > { %s1651_s23 = sshll.u32 %s273_s3, 4  ;;  %s1653_s24 = smul.u32 896, %s1806_s30  ;;  %s291_s23 = int_to_ptr.vmem [resolvable:$true] %s1651_s23 }
  0x2e   : > { %s286_s21 = scalar_lea.hbm %s1778_s0, %s1134_s19  ;;  %s1373_s3 = scalar_lea.hbm %s1778_s0, 168 }
  0x2f   : > { %s288_s16 = sshll.u32 %s286_s21, 4  ;;  %s1364_s27 = sshrl.u32 %s1653_s24, 4  ;;  %s1659_s16 = int_to_ptr.hbm [resolvable:$true] %s288_s16 }
  0x30   : > { %s1362_s18 = sshra.s32 %s1659_s16, 4  ;;  %s1400_s22 = sshll.u32 %s1364_s27, 4  ;;  %s1363_s18 = int_to_ptr.hbm [resolvable:$true] %s1362_s18 }
  0x31   : > { %p1366_p3 = scmp.ne.s32.totalorder %s1400_s22, %s1653_s24  ;;  %s1367_s1 = sadd.s32 1, %s1364_s27 }
  0x32   : > { %p1374_p9 = scmp.lt.s32.totalorder %s1363_s18, %s1778_s0 }
  0x33   : > { %s1808_s1 = smov (!%p1366_p3, %s1367_s1), %s1364_s27 }
  0x34   : > { %s1369_s30 = scalar_lea.hbm %s1363_s18, %s1808_s1 }
  0x35   : > { %p1370_p4 = scmp.ne.s32.totalorder %s1363_s18, %s1369_s30  ;;  %p1375_p12 = scmp.lt.s32.totalorder %s1373_s3, %s1369_s30 }
  0x37   : > { %p1371_p6 = pnand %p1370_p4, %p1646_p2  ;;  %p1376_p13 = por %p1375_p12, %p1374_p9 }
  0x39   : > { %p1372_p7 = pneg %p1371_p6 }
  0x3b   : > { %p1377_p0 = pnand %p1376_p13, %p1372_p7 }
  0x3d   : > { %1380 = shalt.err (!%p1377_p0)
}
  0x3e   : > { %s1381_s20 = sshra.s32 %s291_s23, 4  ;;  %s1516_s27 = smov [#allocation2]   ;;  %s1382_s20 = int_to_ptr.vmem [resolvable:$true] %s1381_s20 }
  0x3f   : > { %s1388_s21 = scalar_lea.vmem %s1382_s20, %s1808_s1  ;;  %s1392_s22 = scalar_lea.vmem %s1516_s27, 224 }
  0x40   : > { %p1389_p1 = scmp.ne.s32.totalorder %s1382_s20, %s1388_s21  ;;  %p1394_p6 = scmp.lt.s32.totalorder %s1392_s22, %s1388_s21 }
  0x42   : > { %p1390_p3 = pnand %p1389_p1, %p1646_p2 }
  0x44   : > { %p1391_p4 = pneg %p1390_p3 }
  0x46   : > { %p1396_p5 = pnand %p1394_p6, %p1391_p4 }
  0x48   : > { %1399 = shalt.err (!%p1396_p5)
}
  0x49   : > { %s1517_s18 = smov 896   ;;  %s1518_s30 = smov 56  }
  0x4a   : > { %296 = dma.hbm_to_vmem [thread:$0]  (%p1646_p2), %s1659_s16, %s1653_s24, %s291_s23, %s1643_s15, %s1517_s18, %s1517_s18, %s1518_s30  }
  0x4b PF: > { %302 = sbr.rel (%p1611_p11) target bundleno = 601 (0x259), region = 48  ;;  %s1686_s1 = sand.u32 (!%p1611_p11), 1, %s1467_s25  }
  0x4c   : > { %s1135_s8 = smul.u32 (!%p1611_p11), 112, %s1686_s1  ;;  %s305_s14 = scalar_lea.sflag (!%p1611_p11), [#allocation3], %s1686_s1 }
  0x4e   : > { %s1690_s3 = scalar_lea.vmem (!%p1611_p11), [#allocation2], %s1135_s8 }
  0x50   : > { %1450 = dma.done.wait (%p1602_p8), %s305_s14, 1792  }
  0x51   : > { %1452 = vsyncadd (%p1602_p8), %s305_s14, 4294965504  ;;  %p1797_p5 = scmp.eq.s32.totalorder %s1578_s28, 0 }
  0x53   : > { %1454 = dma.done.wait (%p1797_p5), [#allocation5], 16640   ;;  %p1798_p11 = pmov %p1797_p5 }
  0x54   : > { %p1799_p2 = pmov %p1797_p5 }
  0x55   : > { %1456 = vsyncadd (%p1798_p11), [#allocation5], 4294950656 }
  0x56   : > { %1458 = dma.done.wait (%p1799_p2), [#allocation8], 4096   ;;  %p1800_p7 = pmov %p1799_p2 }
  0x57   : > { %v394_v0 = vld [vmem:[#allocation4 + $0x78] sm:$0xff]  ;;  %v393_v1 = vld [vmem:[#allocation4 + $0x70] sm:$0xff]  ;;  %v392_v4 = vld [vmem:[#allocation4 + $0x68] sm:$0xff]  ;;  %vm481_vm0 = vcmask 130048   ;;  %s1094_s16 = sshll.u32 %s1686_s1, 4  ;;  %s1098_s17 = sshll.u32 (%p1607_p10), %s1578_s28, 1 }
  0x58   : > { %1460 = vsyncadd (%p1800_p7), [#allocation8], 4294963200  ;;  %v410_v2 = vld [vmem:[#allocation4 + $0xf8] sm:$0xff]  ;;  %488 = vmatpush.msra.mxu0 %v394_v0  ;;  %v409_v3 = vld [vmem:[#allocation4 + $0xf0] sm:$0xff]  ;;  %s1730_s19 = scalar_lea.vmem [#allocation9], %s1094_s16   ;;  %s1114_s20 = sshll.u32 (%p1607_p10), %s1578_s28, 4 }
  0x59   : > { %511 = vmatpush.msra.mxu1 %v410_v2  ;;  %v408_v5 = vld [vmem:[#allocation4 + $0xe8] sm:$0xff]  ;;  %v391_v6 = vld [vmem:[#allocation4 + $0x60] sm:$0xff]  ;;  %v426_v8 = vld [vmem:[#allocation4 + $0x178] sm:$0xff]  ;;  %s825_s21 = ssub.s32 (%p1607_p10), 3, %s1098_s17  ;;  %s1741_s18 = scalar_lea.vmem (%p1607_p10), %s1785_s7, %s1114_s20  }
  0x5a   : > { %489 = vmatpush.msra.mxu0 %v393_v1  ;;  %v407_v7 = vld [vmem:[#allocation4 + $0xe0] sm:$0xff]  ;;  %v425_v9 = vld [vmem:[#allocation4 + $0x170] sm:$0xff]  ;;  %v442_v10 = vld [vmem:[#allocation4 + $0x1f8] sm:$0xff]  ;;  %534 = vmatpush.msra.mxu2 %v426_v8  ;;  %p826_p8 = scmp.lt.s32.totalorder (%p1607_p10), %s825_s21, 2 }
  0x5b   : > { %512 = vmatpush.msra.mxu1 %v409_v3  ;;  %v390_v11 = vld [vmem:[#allocation4 + $0x58] sm:$0xff]  ;;  %557 = vmatpush.msra.mxu3 %v442_v10  ;;  %v424_v13 = vld [vmem:[#allocation4 + $0x168] sm:$0xff]  ;;  %v441_v14 = vld [vmem:[#allocation4 + $0x1f0] sm:$0xff] }
  0x5c   : > { %490 = vmatpush.msra.mxu0 %v392_v4  ;;  %v406_v12 = vld [vmem:[#allocation4 + $0xd8] sm:$0xff]  ;;  %v389_v15 = vld [vmem:[#allocation4 + $0x50] sm:$0xff]  ;;  %535 = vmatpush.msra.mxu2 %v425_v9  ;;  %v440_v17 = vld [vmem:[#allocation4 + $0x1e8] sm:$0xff] }
  0x5d   : > { %513 = vmatpush.msra.mxu1 %v408_v5  ;;  %v405_v16 = vld [vmem:[#allocation4 + $0xd0] sm:$0xff]  ;;  %558 = vmatpush.msra.mxu3 %v441_v14  ;;  %v423_v18 = vld [vmem:[#allocation4 + $0x160] sm:$0xff]  ;;  %v388_v20 = vld [vmem:[#allocation4 + $0x48] sm:$0xff] }
  0x5e   : > { %491 = vmatpush.msra.mxu0 %v391_v6  ;;  %v439_v19 = vld [vmem:[#allocation4 + $0x1e0] sm:$0xff]  ;;  %v404_v21 = vld [vmem:[#allocation4 + $0xc8] sm:$0xff]  ;;  %536 = vmatpush.msra.mxu2 %v424_v13  ;;  %v422_v22 = vld [vmem:[#allocation4 + $0x158] sm:$0xff] }
  0x5f   : > { %514 = vmatpush.msra.mxu1 %v407_v7  ;;  %559 = vmatpush.msra.mxu3 %v440_v17  ;;  %v438_v23 = vld [vmem:[#allocation4 + $0x1d8] sm:$0xff]  ;;  %v387_v24 = vld [vmem:[#allocation4 + $0x40] sm:$0xff]  ;;  %v421_v26 = vld [vmem:[#allocation4 + $0x150] sm:$0xff] }
  0x60   : > { %492 = vmatpush.msra.mxu0 %v390_v11  ;;  %v403_v25 = vld [vmem:[#allocation4 + $0xc0] sm:$0xff]  ;;  %537 = vmatpush.msra.mxu2 %v423_v18  ;;  %v437_v27 = vld [vmem:[#allocation4 + $0x1d0] sm:$0xff]  ;;  %v386_v28 = vld [vmem:[#allocation4 + $0x38] sm:$0xff] }
  0x61   : > { %515 = vmatpush.msra.mxu1 %v406_v12  ;;  %560 = vmatpush.msra.mxu3 %v439_v19  ;;  %v402_v29 = vld [vmem:[#allocation4 + $0xb8] sm:$0xff]  ;;  %v420_v30 = vld [vmem:[#allocation4 + $0x148] sm:$0xff]  ;;  %v385_v32 = vld [vmem:[#allocation4 + $0x30] sm:$0xff] }
  0x62   : > { %493 = vmatpush.msra.mxu0 %v389_v15  ;;  %538 = vmatpush.msra.mxu2 %v422_v22  ;;  %v436_v31 = vld [vmem:[#allocation4 + $0x1c8] sm:$0xff]  ;;  %v401_v33 = vld [vmem:[#allocation4 + $0xb0] sm:$0xff]  ;;  %v419_v34 = vld [vmem:[#allocation4 + $0x140] sm:$0xff] }
  0x63   : > { %516 = vmatpush.msra.mxu1 %v405_v16  ;;  %561 = vmatpush.msra.mxu3 %v438_v23  ;;  %v435_v35 = vld [vmem:[#allocation4 + $0x1c0] sm:$0xff]  ;;  %v384_v36 = vld [vmem:[#allocation4 + $0x28] sm:$0xff]  ;;  %v418_v38 = vld [vmem:[#allocation4 + $0x138] sm:$0xff] }
  0x64   : > { %494 = vmatpush.msra.mxu0 %v388_v20  ;;  %539 = vmatpush.msra.mxu2 %v421_v26  ;;  %v400_v37 = vld [vmem:[#allocation4 + $0xa8] sm:$0xff]  ;;  %v434_v39 = vld [vmem:[#allocation4 + $0x1b8] sm:$0xff]  ;;  %v383_v40 = vld [vmem:[#allocation4 + $0x20] sm:$0xff] }
  0x65   : > { %517 = vmatpush.msra.mxu1 %v404_v21  ;;  %562 = vmatpush.msra.mxu3 %v437_v27  ;;  %v399_v41 = vld [vmem:[#allocation4 + $0xa0] sm:$0xff]  ;;  %v417_v42 = vld [vmem:[#allocation4 + $0x130] sm:$0xff]  ;;  %v382_v44 = vld [vmem:[#allocation4 + $0x18] sm:$0xff] }
  0x66   : > { %495 = vmatpush.msra.mxu0 %v387_v24  ;;  %540 = vmatpush.msra.mxu2 %v420_v30  ;;  %v433_v43 = vld [vmem:[#allocation4 + $0x1b0] sm:$0xff]  ;;  %v398_v45 = vld [vmem:[#allocation4 + $0x98] sm:$0xff]  ;;  %v416_v46 = vld [vmem:[#allocation4 + $0x128] sm:$0xff] }
  0x67   : > { %518 = vmatpush.msra.mxu1 %v403_v25  ;;  %563 = vmatpush.msra.mxu3 %v436_v31  ;;  %v432_v47 = vld [vmem:[#allocation4 + $0x1a8] sm:$0xff]  ;;  %v381_v48 = vld [vmem:[#allocation4 + $0x10] sm:$0xff]  ;;  %v415_v50 = vld [vmem:[#allocation4 + $0x120] sm:$0xff] }
  0x68   : > { %496 = vmatpush.msra.mxu0 %v386_v28  ;;  %541 = vmatpush.msra.mxu2 %v419_v34  ;;  %v397_v49 = vld [vmem:[#allocation4 + $0x90] sm:$0xff]  ;;  %v431_v51 = vld [vmem:[#allocation4 + $0x1a0] sm:$0xff]  ;;  %v380_v52 = vld [vmem:[#allocation4 + $0x8] sm:$0xff] }
  0x69   : > { %519 = vmatpush.msra.mxu1 %v402_v29  ;;  %564 = vmatpush.msra.mxu3 %v435_v35  ;;  %v396_v53 = vld [vmem:[#allocation4 + $0x88] sm:$0xff]  ;;  %v414_v54 = vld [vmem:[#allocation4 + $0x118] sm:$0xff]  ;;  %v379_v56 = vld [vmem:[#allocation4] sm:$0xff] }
  0x6a   : > { %497 = vmatpush.msra.mxu0 %v385_v32  ;;  %542 = vmatpush.msra.mxu2 %v418_v38  ;;  %v430_v55 = vld [vmem:[#allocation4 + $0x198] sm:$0xff]  ;;  %v395_v57 = vld [vmem:[#allocation4 + $0x80] sm:$0xff]  ;;  %v413_v60 = vld [vmem:[#allocation4 + $0x110] sm:$0xff] }
  0x6b   : > { %520 = vmatpush.msra.mxu1 %v401_v33  ;;  %565 = vmatpush.msra.mxu3 %v434_v39  ;;  %v458_v58 = vld [vmem:[#allocation4 + $0x278] sm:$0xff]  ;;  %v429_v61 = vld [vmem:[#allocation4 + $0x190] sm:$0xff]  ;;  %v412_v0 = vld [vmem:[#allocation4 + $0x108] sm:$0xff] }
  0x6c   : > { %498 = vmatpush.msra.mxu0 %v384_v36  ;;  %543 = vmatpush.msra.mxu2 %v417_v42  ;;  %v474_v59 = vld [vmem:[#allocation4 + $0x2f8] sm:$0xff]  ;;  %v457_v62 = vld [vmem:[#allocation4 + $0x270] sm:$0xff]  ;;  %v428_v1 = vld [vmem:[#allocation4 + $0x188] sm:$0xff] }
  0x6d   : > { %521 = vmatpush.msra.mxu1 %v400_v37  ;;  %566 = vmatpush.msra.mxu3 %v433_v43  ;;  %v473_v63 = vld [vmem:[#allocation4 + $0x2f0] sm:$0xff]  ;;  %v456_v2 = vld [vmem:[#allocation4 + $0x268] sm:$0xff]  ;;  %v411_v4 = vld [vmem:[#allocation4 + $0x100] sm:$0xff] }
  0x6e   : > { %499 = vmatpush.msra.mxu0 %v383_v40  ;;  %544 = vmatpush.msra.mxu2 %v416_v46  ;;  %v472_v3 = vld [vmem:[#allocation4 + $0x2e8] sm:$0xff]  ;;  %v427_v5 = vld [vmem:[#allocation4 + $0x180] sm:$0xff]  ;;  %v454_v8 = vld [vmem:[#allocation4 + $0x258] sm:$0xff] }
  0x6f   : > { %522 = vmatpush.msra.mxu1 %v399_v41  ;;  %567 = vmatpush.msra.mxu3 %v432_v47  ;;  %v455_v6 = vld [vmem:[#allocation4 + $0x260] sm:$0xff]  ;;  %v470_v11 = vld [vmem:[#allocation4 + $0x2d8] sm:$0xff]  ;;  %v476_v12 = vld [vmem:[#allocation4 + $0x308] sm:$0xff] }
  0x70   : > { %500 = vmatpush.msra.mxu0 %v382_v44  ;;  %545 = vmatpush.msra.mxu2 %v415_v50  ;;  %v471_v7 = vld [vmem:[#allocation4 + $0x2e0] sm:$0xff]  ;;  %v368_v13 = vld [vmem:[%s1690_s3 + $0x18] sm:$0xff]  ;;  %v453_v14 = vld [vmem:[#allocation4 + $0x250] sm:$0xff] }
  0x71   : > { %523 = vmatpush.msra.mxu1 %v398_v45  ;;  %568 = vmatpush.msra.mxu3 %v431_v51  ;;  %v367_v9 = vld [vmem:[%s1690_s3 + $0x10] sm:$0xff]  ;;  %v365_v10 = vld [vmem:[%s1690_s3] sm:$0xff]  ;;  %v366_v16 = vld [vmem:[%s1690_s3 + $0x8] sm:$0xff] }
  0x72   : > { %501 = vmatpush.msra.mxu0 %v381_v48  ;;  %546 = vmatpush.msra.mxu2 %v414_v54  ;;  %v469_v15 = vld [vmem:[#allocation4 + $0x2d0] sm:$0xff]  ;;  %v475_v17 = vld [vmem:[#allocation4 + $0x300] sm:$0xff]  ;;  %v452_v18 = vld [vmem:[#allocation4 + $0x248] sm:$0xff] }
  0x73   : > { %524 = vmatpush.msra.mxu1 %v397_v49  ;;  %569 = vmatpush.msra.mxu3 %v430_v55  ;;  %v468_v19 = vld [vmem:[#allocation4 + $0x2c8] sm:$0xff]  ;;  %v679_v20 = vld [vmem:[#allocation6 + $0xf0] sm:$0xff]  ;;  %v450_v26 = vld [vmem:[#allocation4 + $0x238] sm:$0xff] }
  0x74   : > { %502 = vmatpush.msra.mxu0 %v380_v52  ;;  %547 = vmatpush.msra.mxu2 %v413_v60  ;;  %v680_v21 = vld [vmem:[#allocation6 + $0xf8] sm:$0xff]  ;;  %v451_v22 = vld [vmem:[#allocation4 + $0x240] sm:$0xff]  ;;  %v466_v27 = vld [vmem:[#allocation4 + $0x2b8] sm:$0xff] }
  0x75   : > { %525 = vmatpush.msra.mxu1 %v396_v53  ;;  %570 = vmatpush.msra.mxu3 %v429_v61  ;;  %v467_v23 = vld [vmem:[#allocation4 + $0x2c0] sm:$0xff]  ;;  %v374_v24 = vld [vmem:[%s1690_s3 + $0x48] sm:$0xff]  ;;  %v372_v25 = vld [vmem:[%s1690_s3 + $0x38] sm:$0xff] }
  0x76   : > { %503 = vmatpush.msra.mxu0 %v379_v56  ;;  %548 = vmatpush.msra.mxu2 %v412_v0  ;;  %v375_v28 = vld [vmem:[%s1690_s3 + $0x50] sm:$0xff]  ;;  %v678_v29 = vld [vmem:[#allocation6 + $0xe8] sm:$0xff]  ;;  %v373_v32 = vld [vmem:[%s1690_s3 + $0x40] sm:$0xff] }
  0x77   : > { %526 = vmatpush.msra.mxu1 %v395_v57  ;;  %571 = vmatpush.msra.mxu3 %v428_v1  ;;  %v449_v30 = vld [vmem:[#allocation4 + $0x230] sm:$0xff]  ;;  %v448_v34 = vld [vmem:[#allocation4 + $0x228] sm:$0xff]  ;;  %v675_v36 = vld [vmem:[#allocation6 + $0xd0] sm:$0xff] }
  0x78   : > { %580 = vmatpush.msrb.mxu0 %v458_v58  ;;  %549 = vmatpush.msra.mxu2 %v411_v4  ;;  %v465_v31 = vld [vmem:[#allocation4 + $0x2b0] sm:$0xff]  ;;  %v464_v35 = vld [vmem:[#allocation4 + $0x2a8] sm:$0xff]  ;;  %v447_v38 = vld [vmem:[#allocation4 + $0x220] sm:$0xff] }
  0x79   : > { %603 = vmatpush.msrb.mxu1 %v474_v59  ;;  %572 = vmatpush.msra.mxu3 %v427_v5  ;;  %v677_v33 = vld [vmem:[#allocation6 + $0xe0] sm:$0xff]  ;;  %v676_v37 = vld [vmem:[#allocation6 + $0xd8] sm:$0xff]  ;;  %v463_v39 = vld [vmem:[#allocation4 + $0x2a0] sm:$0xff] }
  0x7a   : > { %581 = vmatpush.msrb.mxu0 %v457_v62  ;;  %550 = vmatmul.f32.vlgmr.msra.gmra.mxu2 %v367_v9  ;;  %v371_v40 = vld [vmem:[%s1690_s3 + $0x30] sm:$0xff]  ;;  %v446_v42 = vld [vmem:[#allocation4 + $0x218] sm:$0xff]  ;;  %v444_v47 = vld [vmem:[#allocation4 + $0x208] sm:$0xff] }
  0x7b   : > { %604 = vmatpush.msrb.mxu1 %v473_v63  ;;  %504 = vmatmul.f32.vlgmr.msra.gmra.mxu0 %v365_v10  ;;  %v673_v41 = vld [vmem:[#allocation6 + $0xc0] sm:$0xff]  ;;  %v462_v43 = vld [vmem:[#allocation4 + $0x298] sm:$0xff]  ;;  %v460_v48 = vld [vmem:[#allocation4 + $0x288] sm:$0xff] }
  0x7c   : > { %582 = vmatpush.msrb.mxu0 %v456_v2  ;;  %640 = vmatpush.msrb.mxu2 %v476_v12  ;;  %v674_v44 = vld [vmem:[#allocation6 + $0xc8] sm:$0xff]  ;;  %v445_v45 = vld [vmem:[#allocation4 + $0x210] sm:$0xff]  ;;  %v443_v49 = vld [vmem:[#allocation4 + $0x200] sm:$0xff] }
  0x7d   : > { %605 = vmatpush.msrb.mxu1 %v472_v3  ;;  %573 = vmatmul.f32.vlgmr.msra.gmra.mxu3 %v368_v13  ;;  %v461_v46 = vld [vmem:[#allocation4 + $0x290] sm:$0xff]  ;;  %v459_v50 = vld [vmem:[#allocation4 + $0x280] sm:$0xff]  ;;  %v370_v52 = vld [vmem:[%s1690_s3 + $0x28] sm:$0xff] }
  0x7e   : > { %583 = vmatpush.msrb.mxu0 %v455_v6  ;;  %527 = vmatmul.f32.vlgmr.msra.gmra.mxu1 %v366_v16  ;;  %v369_v51 = vld [vmem:[%s1690_s3 + $0x20] sm:$0xff]  ;;  %v378_v53 = vld [vmem:[%s1690_s3 + $0x68] sm:$0xff]  ;;  %v376_v54 = vld [vmem:[%s1690_s3 + $0x58] sm:$0xff] }
  0x7f   : > { %606 = vmatpush.msrb.mxu1 %v471_v7  ;;  %641 = vmatpush.msrb.mxu2 %v475_v17  ;;  %v377_v55 = vld [vmem:[%s1690_s3 + $0x60] sm:$0xff]  ;;  %v672_v57 = vld [vmem:[#allocation6 + $0xb8] sm:$0xff]  ;;  %v670_v59 = vld [vmem:[#allocation6 + $0xa8] sm:$0xff] }
  0x80   : > { %584 = vmatpush.msrb.mxu0 %v454_v8  ;;  %687 = vmatpush.msrb.mxu3 %v679_v20  ;;  %v671_v56 = vld [vmem:[#allocation6 + $0xb0] sm:$0xff]  ;;  %v669_v58 = vld [vmem:[#allocation6 + $0xa0] sm:$0xff]  ;;  %v668_v61 = vld [vmem:[#allocation6 + $0x98] sm:$0xff] }
  0x81   : > { %607 = vmatpush.msrb.mxu1 %v470_v11  ;;  %710 = vmatpush.msra.mxu2 %v680_v21  ;;  %v667_v60 = vld [vmem:[#allocation6 + $0x90] sm:$0xff]  ;;  %v665_v62 = vld [vmem:[#allocation6 + $0x80] sm:$0xff]  ;;  %v666_v63 = vld [vmem:[#allocation6 + $0x88] sm:$0xff] }
  0x82   : > { %585 = vmatpush.msrb.mxu0 %v453_v14  ;;  %553 = vmatmul.f32.gmra.mxu2 %v374_v24  ;;  %v663_v0 = vld [vmem:[#allocation6 + $0x70] sm:$0xff]  ;;  %v664_v1 = vld [vmem:[#allocation6 + $0x78] sm:$0xff]  ;;  %v661_v2 = vld [vmem:[#allocation6 + $0x60] sm:$0xff] }
  0x83   : > { %608 = vmatpush.msrb.mxu1 %v469_v15  ;;  %507 = vmatmul.f32.gmra.mxu0 %v372_v25  ;;  %v662_v3 = vld [vmem:[#allocation6 + $0x68] sm:$0xff]  ;;  %v659_v4 = vld [vmem:[#allocation6 + $0x50] sm:$0xff]  ;;  %v660_v5 = vld [vmem:[#allocation6 + $0x58] sm:$0xff] }
  0x84   : > { %586 = vmatpush.msrb.mxu0 %v452_v18  ;;  %711 = vmatpush.msra.mxu2 %v678_v29  ;;  %v657_v6 = vld [vmem:[#allocation6 + $0x40] sm:$0xff]  ;;  %v658_v7 = vld [vmem:[#allocation6 + $0x48] sm:$0xff]  ;;  %v655_v8 = vld [vmem:[#allocation6 + $0x30] sm:$0xff] }
  0x85   : > { %609 = vmatpush.msrb.mxu1 %v468_v19  ;;  %576 = vmatmul.f32.gmra.mxu3 %v375_v28  ;;  %v656_v9 = vld [vmem:[#allocation6 + $0x38] sm:$0xff]  ;;  %v653_v10 = vld [vmem:[#allocation6 + $0x20] sm:$0xff]  ;;  %v654_v11 = vld [vmem:[#allocation6 + $0x28] sm:$0xff] }
  0x86   : > { %587 = vmatpush.msrb.mxu0 %v451_v22  ;;  %530 = vmatmul.f32.gmra.mxu1 %v373_v32  ;;  %v651_v12 = vld [vmem:[#allocation6 + $0x10] sm:$0xff]  ;;  %v652_v13 = vld [vmem:[#allocation6 + $0x18] sm:$0xff]  ;;  %v649_v14 = vld [vmem:[#allocation6] sm:$0xff] }
  0x87   : > { %610 = vmatpush.msrb.mxu1 %v467_v23  ;;  %688 = vmatpush.msrb.mxu3 %v677_v33  ;;  %v650_v15 = vld [vmem:[#allocation6 + $0x8] sm:$0xff]  ;;  %v1270_v18 = vld [vmem:[%s1780_s2] ss:$0 sm:$0xff]  ;;  %v748_v20 = vld [vmem:[#allocation7 + $0x78] sm:$0xff] }
  0x88   : > { %588 = vmatpush.msrb.mxu0 %v450_v26  ;;  %712 = vmatpush.msra.mxu2 %v676_v37  ;;  %v764_v21 = vld [vmem:[#allocation7 + $0xf8] sm:$0xff]  ;;  %v747_v22 = vld [vmem:[#allocation7 + $0x70] sm:$0xff]  ;;  %v746_v24 = vld [vmem:[#allocation7 + $0x68] sm:$0xff] }
  0x89   : > { %611 = vmatpush.msrb.mxu1 %v466_v27  ;;  %689 = vmatpush.msrb.mxu3 %v675_v36  ;;  %v763_v23 = vld [vmem:[#allocation7 + $0xf0] sm:$0xff]  ;;  %v762_v25 = vld [vmem:[#allocation7 + $0xe8] sm:$0xff]  ;;  %v745_v27 = vld [vmem:[#allocation7 + $0x60] sm:$0xff] }
  0x8a   : > { %589 = vmatpush.msrb.mxu0 %v449_v30  ;;  %1095 = vmatmul.msk.f32.vlgmr.msrb.gmra.mxu2 %vm481_vm0, %v371_v40  ;;  %v761_v28 = vld [vmem:[#allocation7 + $0xe0] sm:$0xff]  ;;  %v744_v30 = vld [vmem:[#allocation7 + $0x58] sm:$0xff]  ;;  %v759_v36 = vld [vmem:[#allocation7 + $0xd0] sm:$0xff] }
  0x8b   : > { %612 = vmatpush.msrb.mxu1 %v465_v31  ;;  %690 = vmatpush.msrb.mxu3 %v673_v41  ;;  %v760_v31 = vld [vmem:[#allocation7 + $0xd8] sm:$0xff]  ;;  %v742_v37 = vld [vmem:[#allocation7 + $0x48] sm:$0xff] }
  0x8c   : > { %590 = vmatpush.msrb.mxu0 %v448_v34  ;;  %713 = vmatpush.msra.mxu2 %v674_v44  ;;  %v740_v44 = vld [vmem:[#allocation7 + $0x38] sm:$0xff] }
  0x8d   : > { %613 = vmatpush.msrb.mxu1 %v464_v35  ;;  %691 = vmatpush.msrb.mxu3 %v671_v56  ;;  %v743_v35 = vld [vmem:[#allocation7 + $0x50] sm:$0xff] }
  0x8e   : > { %591 = vmatpush.msrb.mxu0 %v447_v38  ;;  %714 = vmatpush.msra.mxu2 %v672_v57  ;;  %v758_v38 = vld [vmem:[#allocation7 + $0xc8] sm:$0xff] }
  0x8f   : > { %614 = vmatpush.msrb.mxu1 %v463_v39  ;;  %692 = vmatpush.msrb.mxu3 %v669_v58  ;;  %v737_v58 = vld [vmem:[#allocation7 + $0x20] sm:$0xff] }
  0x90   : > { %592 = vmatpush.msrb.mxu0 %v446_v42  ;;  %715 = vmatpush.msra.mxu2 %v670_v59  ;;  %v741_v42 = vld [vmem:[#allocation7 + $0x40] sm:$0xff] }
  0x91   : > { %615 = vmatpush.msrb.mxu1 %v462_v43  ;;  %693 = vmatpush.msrb.mxu3 %v667_v60  ;;  %v757_v43 = vld [vmem:[#allocation7 + $0xc0] sm:$0xff] }
  0x92   : > { %593 = vmatpush.msrb.mxu0 %v445_v45  ;;  %1096 = vmatmul.msk.f32.gmra.mxu2 %vm481_vm0, %v378_v53  ;;  %v756_v45 = vld [vmem:[#allocation7 + $0xb8] sm:$0xff]  ;;  %v753_v59 = vld [vmem:[#allocation7 + $0xa0] sm:$0xff] }
  0x93   : > { %616 = vmatpush.msrb.mxu1 %v461_v46  ;;  %716 = vmatpush.msra.mxu2 %v668_v61 }
  0x94   : > { %594 = vmatpush.msrb.mxu0 %v444_v47  ;;  %694 = vmatpush.msrb.mxu3 %v665_v62  ;;  %v736_v62 = vld [vmem:[#allocation7 + $0x18] sm:$0xff] }
  0x95   : > { %617 = vmatpush.msrb.mxu1 %v460_v48  ;;  %717 = vmatpush.msra.mxu2 %v666_v63  ;;  %v752_v63 = vld [vmem:[#allocation7 + $0x98] sm:$0xff] }
  0x96   : > { %595 = vmatpush.msrb.mxu0 %v443_v49  ;;  %695 = vmatpush.msrb.mxu3 %v663_v0  ;;  %v739_v49 = vld [vmem:[#allocation7 + $0x30] sm:$0xff] }
  0x97   : > { %618 = vmatpush.msrb.mxu1 %v459_v50  ;;  %596 = vmatmul.f32.vlgmr.msrb.gmra.mxu0 %v369_v51  ;;  %v755_v50 = vld [vmem:[#allocation7 + $0xb0] sm:$0xff] }
  0x98   : > { %619 = vmatmul.f32.vlgmr.msrb.gmra.mxu1 %v370_v52  ;;  %718 = vmatpush.msra.mxu2 %v664_v1  ;;  %v735_v1 = vld [vmem:[#allocation7 + $0x10] sm:$0xff] }
  0x99   : > { %696 = vmatpush.msrb.mxu3 %v661_v2  ;;  %769 = vmatpush.msra.mxu0 %v748_v20  ;;  %v751_v2 = vld [vmem:[#allocation7 + $0x90] sm:$0xff] }
  0x9a   : > { %719 = vmatpush.msra.mxu2 %v662_v3  ;;  %792 = vmatpush.msra.mxu1 %v764_v21 }
  0x9b   : > { %697 = vmatpush.msrb.mxu3 %v659_v4  ;;  %770 = vmatpush.msra.mxu0 %v747_v22 }
  0x9c   : > { %720 = vmatpush.msra.mxu2 %v660_v5  ;;  %793 = vmatpush.msra.mxu1 %v763_v23 }
  0x9d   : > { %698 = vmatpush.msrb.mxu3 %v657_v6  ;;  %771 = vmatpush.msra.mxu0 %v746_v24 }
  0x9e   : > { %721 = vmatpush.msra.mxu2 %v658_v7  ;;  %794 = vmatpush.msra.mxu1 %v762_v25 }
  0x9f   : > { %599 = vmatmul.f32.gmra.mxu0 %v376_v54  ;;  %699 = vmatpush.msrb.mxu3 %v655_v8  ;;  %v738_v54 = vld [vmem:[#allocation7 + $0x28] sm:$0xff] }
  0xa0   : > { %622 = vmatmul.f32.gmra.mxu1 %v377_v55  ;;  %722 = vmatpush.msra.mxu2 %v656_v9  ;;  %v754_v55 = vld [vmem:[#allocation7 + $0xa8] sm:$0xff] }
  0xa1   : > { %700 = vmatpush.msrb.mxu3 %v653_v10  ;;  %772 = vmatpush.msra.mxu0 %v745_v27  ;;  %v734_v9 = vld [vmem:[#allocation7 + $0x8] sm:$0xff] }
  0xa2   : > { %723 = vmatpush.msra.mxu2 %v654_v11  ;;  %795 = vmatpush.msra.mxu1 %v761_v28  ;;  %v750_v10 = vld [vmem:[#allocation7 + $0x88] sm:$0xff]  ;;  %v733_v11 = vld [vmem:[#allocation7] sm:$0xff] }
  0xa3   : > { %701 = vmatpush.msrb.mxu3 %v651_v12  ;;  %773 = vmatpush.msra.mxu0 %v744_v30  ;;  %v749_v12 = vld [vmem:[#allocation7 + $0x80] sm:$0xff] }
  0xa4   : > { %724 = vmatpush.msra.mxu2 %v652_v13  ;;  %796 = vmatpush.msra.mxu1 %v760_v31  ;;  %v681_v13 = vld [vmem:[%s1782_s4] sm:$0x3] }
  0xa5   : > { %702 = vmatpush.msrb.mxu3 %v649_v14  ;;  %774 = vmatpush.msra.mxu0 %v743_v35  ;;  %v683_v14 = vperm.slane %v681_v13, 0 }
  0xa6   : > { %725 = vmatpush.msra.mxu2 %v650_v15  ;;  %797 = vmatpush.msra.mxu1 %v759_v36  ;;  %v684_v15 = vperm.slane %v681_v13, 1 }
  0xa7   : > { %1117 = vmatpush.msra.mxu3 %v748_v20  ;;  %775 = vmatpush.msra.mxu0 %v742_v37 }
  0xa8   : > { %798 = vmatpush.msra.mxu1 %v758_v38 }
  0xa9   : > { %1118 = vmatpush.msra.mxu3 %v747_v22  ;;  %776 = vmatpush.msra.mxu0 %v741_v42 }
  0xaa   : > { %799 = vmatpush.msra.mxu1 %v757_v43 }
  0xab   : > { %1119 = vmatpush.msra.mxu3 %v746_v24  ;;  %777 = vmatpush.msra.mxu0 %v740_v44  ;;  %v1271_v24 = vld [vmem:[%s1784_s6] ss:$0 sm:$0xff] }
  0xac   : > { %800 = vmatpush.msra.mxu1 %v756_v45 }
  0xad   : > { %1120 = vmatpush.msra.mxu3 %v745_v27  ;;  %778 = vmatpush.msra.mxu0 %v739_v49 }
  0xae   : > { %801 = vmatpush.msra.mxu1 %v755_v50 }
  0xaf   : > { %1121 = vmatpush.msra.mxu3 %v744_v30  ;;  %779 = vmatpush.msra.mxu0 %v738_v54 }
  0xb0   : > { %802 = vmatpush.msra.mxu1 %v754_v55 }
  0xb1   : > { %1122 = vmatpush.msra.mxu3 %v743_v35  ;;  %780 = vmatpush.msra.mxu0 %v737_v58 }
  0xb2   : > { %803 = vmatpush.msra.mxu1 %v753_v59 }
  0xb3   : > { %1123 = vmatpush.msra.mxu3 %v742_v37  ;;  %781 = vmatpush.msra.mxu0 %v736_v62 }
  0xb4   : > { %804 = vmatpush.msra.mxu1 %v752_v63 }
  0xb5   : > { %1124 = vmatpush.msra.mxu3 %v741_v42  ;;  %782 = vmatpush.msra.mxu0 %v735_v1 }
  0xb6   : > { %805 = vmatpush.msra.mxu1 %v751_v2 }
  0xb7   : > { %1125 = vmatpush.msra.mxu3 %v740_v44  ;;  %783 = vmatpush.msra.mxu0 %v734_v9 }
  0xb8   : > { %806 = vmatpush.msra.mxu1 %v750_v10 }
  0xb9   : > { %1126 = vmatpush.msra.mxu3 %v739_v49  ;;  %784 = vmatpush.msra.mxu0 %v733_v11 }
  0xba   : > { %807 = vmatpush.msra.mxu1 %v749_v12 }
  0xbb   : > { %1127 = vmatpush.msra.mxu3 %v738_v54 }
  0xbd   : > { %1128 = vmatpush.msra.mxu3 %v737_v58 }
  0xbf   : > { %1129 = vmatpush.msra.mxu3 %v736_v62 }
  0xc1   : > { %1130 = vmatpush.msra.mxu3 %v735_v1 }
  0xc3   : > { %1131 = vmatpush.msra.mxu3 %v734_v9 }
  0xc5   : > { %1132 = vmatpush.msra.mxu3 %v733_v11 }
  0xf8   : > { %v505_v16 = vpop.f32.mrf.mxu0 }
  0xf9   : > { %v506_v26 = vadd.f32 %v1270_v18, %v505_v16 }
  0xfb   : > { %v528_v17 = vpop.f32.mrf.mxu1 }
  0xfc   : > { %v529_v34 = vadd.f32 %v528_v17, %v506_v26 }
  0xfd   : > { %v551_v19 = vpop.f32.mrf.mxu2 }
  0xfe   : > { %v552_v40 = vadd.f32 %v551_v19, %v529_v34 }
 0x100   : > { %v508_v29 = vpop.f32.mrf.mxu0  ;;  %v574_v39 = vpop.f32.mrf.mxu3 }
 0x101   : > { %v509_v41 = vadd.f32 %v1270_v18, %v508_v29  ;;  %v575_v46 = vadd.f32 %v574_v39, %v552_v40 }
 0x103   : > { %v531_v32 = vpop.f32.mrf.mxu1 }
 0x104   : > { %v532_v47 = vadd.f32 %v531_v32, %v509_v41 }
 0x105   : > { %v554_v33 = vpop.f32.mrf.mxu2 }
 0x106   : > { %v555_v56 = vadd.f32 %v554_v33, %v532_v47 }
 0x108   : > { %v577_v60 = vpop.f32.mrf.mxu3 }
 0x109   : > { %v578_v0 = vadd.f32 %v577_v60, %v555_v56 }
 0x10d   : > { %v643_v48 = vpop.f32.mrf.mxu2 }
 0x114   : > { %v597_v51 = vpop.f32.mrf.mxu0 }
 0x115   : > { %v620_v52 = vpop.f32.mrf.mxu1  ;;  %v598_v53 = vadd.f32 %v597_v51, %v575_v46  ;;  %v646_v6 = vpop.f32.mrf.mxu2 }
 0x117   : > { %v621_v57 = vadd.f32 %v620_v52, %v598_v53 }
 0x119   : > { %v644_v61 = vadd.f32 %v643_v48, %v621_v57 }
 0x11b   : > { %703 = vmatmul.f32.vlgmr.msrb.gmra.mxu3 %v644_v61  ;;  %726 = vmatmul.f32.vlgmr.msra.gmra.mxu2 %v644_v61 }
 0x11c   : > { %v600_v3 = vpop.f32.mrf.mxu0 }
 0x11d   : > { %v623_v4 = vpop.f32.mrf.mxu1  ;;  %v601_v5 = vadd.f32 %v600_v3, %v578_v0 }
 0x11f   : > { %v624_v7 = vadd.f32 %v623_v4, %v601_v5 }
 0x121   : > { %v647_v8 = vadd.f32 %v646_v6, %v624_v7 }
 0x123   : > { %706 = vmatmul.f32.gmra.mxu3 %v647_v8  ;;  %729 = vmatmul.f32.gmra.mxu2 %v647_v8 }
 0x19e   : > { %v704_v16 = vpop.f32.mrf.mxu3  ;;  %v727_v17 = vpop.f32.mrf.mxu2 }
 0x19f   : > { %v705_v18 = vadd.f32 %v704_v16, %v683_v14  ;;  %v728_v19 = vadd.f32 %v727_v17, %v684_v15 }
 0x1a1   : > { %785 = vmatmul.f32.vlgmr.msra.gmra.mxu0 %v705_v18  ;;  %808 = vmatmul.f32.vlgmr.msra.gmra.mxu1 %v728_v19 }
 0x1a6   : > { %v707_v20 = vpop.f32.mrf.mxu3  ;;  %v730_v21 = vpop.f32.mrf.mxu2 }
 0x1a7   : > { %v708_v22 = vadd.f32 %v707_v20, %v683_v14  ;;  %v731_v23 = vadd.f32 %v730_v21, %v684_v15 }
 0x1a9   : > { %788 = vmatmul.f32.vlgmr.msra.gmra.mxu3 %v708_v22  ;;  %811 = vmatmul.f32.gmra.mxu1 %v731_v23 }
 0x21e   : > { %v786_v25 = vpop.f32.mrf.mxu0  ;;  %v809_v27 = vpop.f32.mrf.mxu1 }
 0x21f   : > { %v787_v26 = vadd.f32 %v1271_v24, %v786_v25 }
 0x221   : > { %v810_v28 = vadd.f32 %v809_v27, %v787_v26 }
 0x223   : > { %815 = vst [vmem:[%s1730_s19] sm:$0xff] %v810_v28 }
 0x226   : > { %v812_v31 = vpop.f32.mrf.mxu1 }
 0x22c   : > { %v789_v29 = vpop.f32.mrf.mxu3 }
 0x22d   : > { %v790_v30 = vadd.f32 %v1271_v24, %v789_v29  ;;  %823 = sbr.rel (!%p1607_p10) target bundleno = 601 (0x259), region = 68 }
 0x22f   : > { %v813_v32 = vadd.f32 %v812_v31, %v790_v30 }
 0x231   : > { %816 = vst [vmem:[%s1730_s19 + $0x8] sm:$0xff] %v813_v32 }
 0x232   : > { %s1810_s21 = smov (!%p826_p8, %s825_s21), 2 }
 0x233   : > { %s1099_s30 = sshll.u32 %s1810_s21, 3 }
 0x234   : > { %p1102_p9 = scmp.eq.s32.totalorder %s1099_s30, 0 }
 0x235   : > { %s1747_s12 = sshrl.u32 (!%p1102_p9), %s1810_s21, 1 }
 0x236   : > { %834 = sbr.rel (%p1102_p9) target bundleno = 601 (0x259), region = 72  ;;  %p1103_p10 = scmp.le.s32.totalorder (!%p1102_p9), %s1747_s12, 0 }
 0x23b   : > { %1003 = sbr.rel (%p1103_p10) target bundleno = 584 (0x248), region = 154  ;;  %s1477_s28 = smov (!%p1103_p10), %s1741_s18  }
 0x23c   : > { %s1481_s1 = smov (!%p1103_p10), %s1730_s19   ;;  %s1485_s8 = smov (!%p1103_p10), 0  }
 0x23d   : > { %s1489_s14 = smov (!%p1103_p10), 0  }
 0x240 LB: >> { %v899_v33 = vld [vmem:[%s1483_s1] sm:$0xff]  ;;  %v901_v34 = vld [vmem:[%s1483_s1 + $0x8] sm:$0xff]  ;;  %s903_s3 = sadd.s32 1, %s1487_s8  ;;  %s893_s14 = sadd.s32 1, %s1491_s14   ;;  %s1491_s14 = sphi %s1489_s14, %s893_s14   ;;  %s1487_s8 = sphi %s1485_s8, %s1486_s8   ;;  %s1483_s1 = sphi %s1481_s1, %s908_s1   ;;  %s1479_s28 = sphi %s1477_s28, %s909_s28  }
 0x241   : >> { %900 = vst [vmem:[%s1479_s28] sm:$0xff] %v899_v33  ;;  %p904_p12 = scmp.ge.s32.totalorder %s903_s3, %s1747_s12  ;;  %p892_p13 = scmp.ge.s32.totalorder %s893_s14, %s1747_s12 }
 0x242   : >> { %902 = vst [vmem:[%s1479_s28 + $0x8] sm:$0xff] %v901_v34 }
 0x243   : >> { %s1812_s3 = smov (%p904_p12, %s903_s3), 0  ;;  %895 = sbr.rel (!%p892_p13) target bundleno = 576 (0x240), region = 160 }
 0x244   : >> { %s1104_s11 = sshll.u32 %s1812_s3, 4  ;;  %s1486_s8 = smov %s1812_s3  }
 0x245   : >> { %s908_s1 = scalar_lea.vmem %s1730_s19, %s1104_s11 [#allocation9]   ;;  %s909_s28 = scalar_lea.vmem %s1741_s18, %s1104_s11  }
 0x248 PF: > { %s1757_s13 = sand.u32 1, %s1810_s21   ;;  %s1115_s15 = sshll.u32 %s1747_s12, 4 }
 0x249   : > { %s914_s10 = scalar_lea.vmem %s1730_s19, %s1115_s15 [#allocation9]   ;;  %s916_s23 = scalar_lea.vmem %s1741_s18, %s1115_s15  }
 0x24a   : > { %p1109_p0 = scmp.le.s32.totalorder %s1757_s13, 0 }
 0x24b   : > { %s1493_s24 = smov (!%p1109_p0), %s916_s23   ;;  %s1497_s16 = smov (!%p1109_p0), %s914_s10  }
 0x24c   : > { %1017 = sbr.rel (%p1109_p0) target bundleno = 601 (0x259), region = 165  ;;  %s1501_s17 = smov (!%p1109_p0), 0  }
 0x24d   : > { %s1505_s20 = smov (!%p1109_p0), 0  }
 0x251 LB: >> { %v926_v35 = vld [vmem:[%s1499_s16] sm:$0xff]  ;;  %s928_s21 = sadd.s32 1, %s1503_s17  ;;  %s920_s20 = sadd.s32 1, %s1507_s20   ;;  %s1507_s20 = sphi %s1505_s20, %s920_s20   ;;  %s1503_s17 = sphi %s1501_s17, %s1502_s17   ;;  %s1499_s16 = sphi %s1497_s16, %s933_s16   ;;  %s1495_s24 = sphi %s1493_s24, %s934_s24  }
 0x252   : >> { %927 = vst [vmem:[%s1495_s24] sm:$0xff] %v926_v35  ;;  %p929_p1 = scmp.ge.s32.totalorder %s928_s21, %s1757_s13  ;;  %p919_p3 = scmp.ge.s32.totalorder %s920_s20, %s1757_s13 }
 0x254   : >> { %s1814_s21 = smov (%p929_p1, %s928_s21), 0  ;;  %922 = sbr.rel (!%p919_p3) target bundleno = 593 (0x251), region = 171 }
 0x255   : >> { %s1110_s19 = sshll.u32 %s1814_s21, 3  ;;  %s1502_s17 = smov %s1814_s21  }
 0x256   : >> { %s933_s16 = scalar_lea.vmem %s914_s10, %s1110_s19 [#allocation9]   ;;  %s934_s24 = scalar_lea.vmem %s916_s23, %s1110_s19  }
 0x259 PF: > { %p19_p4 = scmp.ge.s32.totalorder %s1581_s29, 4   ;;  %s1801_s24 = smov %s1467_s25 }
 0x25a   : > { %s1802_s25 = smov %s1471_s26  ;;  %s1803_s26 = smov %s1591_s9 }
 0x25b   : > { %s1804_s27 = smov %s1581_s29  ;;  %21 = sbr.rel (!%p19_p4) target bundleno = 8 (0x8), region = 182 }
 0x260   :  { %950 = vsyncpa [#allocation3], 1 }
 0x261   :  { %952 = vsyncpa [#allocation3 + $0x1], 1 }
 0x262   :  { %953 = vsyncpa [#allocation5], 1 }
 0x263   :  { %954 = vsyncpa [#allocation8], 1 }

</bundles_post_ra>
